<compile_context>
chip_gen: v7x
topology: tpu7x:2x2x1
jax: 0.10.0
libtpu: 0.0.40
codegen_flags: <defaults>
</compile_context>

<pallas_src>
import functools

import jax
import jax.numpy as jnp
from jax.experimental import pallas as pl
from jax.experimental.pallas import tpu as pltpu

R_M = 1.0
B_J0 = 0.01


# ----------------------------------------------------------------------------
# Kernel
# ----------------------------------------------------------------------------
def _mem_adp_skip_update_kernel(inputs_ref, mem_ref, spike_ref, b_ref, params_ref,
                                mem_out_ref, spike_out_ref, bigB_out_ref, b_out_ref,
                                *, dt, beta):
    inputs = inputs_ref[...]          # (TB, TH)
    mem = mem_ref[...]                # (TB, TH)
    spike = spike_ref[...]            # (TB, TH)
    b = b_ref[...]                    # (TB, TH)
    shape = mem.shape

    # Packed per-neuron params: rows = [alpha, 1-alpha, ro, 1-ro, mask].
    # Broadcast each row exactly once; the big elementwise chain then runs on
    # full (TB, TH) vregs with no repeated sublane-broadcasts.
    params = params_ref[...]                              # (5, TH)
    alpha = jnp.broadcast_to(params[0:1, :], shape)
    one_m_alpha = jnp.broadcast_to(params[1:2, :], shape)
    ro = jnp.broadcast_to(params[2:3, :], shape)
    one_m_ro = jnp.broadcast_to(params[3:4, :], shape)
    mask = jnp.broadcast_to(params[4:5, :], shape)

    b_new = ro * b + one_m_ro * spike                     # adaptive threshold state
    bigB = B_J0 + beta * b_new                            # threshold
    mem_new = mem * alpha + one_m_alpha * (R_M * inputs) - bigB * (spike * dt)
    mem_new = jnp.where(mask == 0.0, mem, mem_new)        # skip-gate (keep pre_mem)
    # ActFun_adp forward: heaviside(mem - B), gated by the skip mask.
    spike_new = (mem_new - bigB > 0.0).astype(mem_new.dtype) * mask

    mem_out_ref[...] = mem_new
    spike_out_ref[...] = spike_new
    bigB_out_ref[...] = bigB
    b_out_ref[...] = b_new


# ----------------------------------------------------------------------------
# Tiling / VMEM policy
# ----------------------------------------------------------------------------
def _vmem_capacity_bytes():
    try:
        return int(pltpu.get_tpu_info().vmem_capacity_bytes)
    except Exception:
        return 64 * 1024 * 1024   # conservative (v7x-safe) fallback


def _vmem_policy():
    cap = _vmem_capacity_bytes()
    if cap >= 100 * 1024 * 1024:
        # v5e / v6e: 128 MiB physical VMEM -> ~4 MiB per-array blocks.
        return 96 * 1024 * 1024, 4 * 1024 * 1024
    # v7x: 64 MiB per TensorCore -> ~2 MiB per-array blocks.
    return 48 * 1024 * 1024, 2 * 1024 * 1024


def _pick_dim_tile(n, base, cap):
    """Tile for a dim of extent n: full dim if it fits; else the largest
    multiple of `base` <= cap that divides n (no partial tiles); else the
    largest multiple of `base` <= cap."""
    if n <= cap:
        return n
    hi = max(cap, base) // base * base
    d = hi
    while d >= base:
        if n % d == 0:
            return d
        d -= base
    return hi


def _pick_tiles(bsz, hid, tb, th, blk_bytes):
    if th is None:
        th = _pick_dim_tile(hid, 128, 2048)
    if tb is None:
        tb_cap = max(8, (blk_bytes // (th * 4)) // 8 * 8)
        tb = _pick_dim_tile(bsz, 8, tb_cap)

    # v7x megacore: if the grid has >1 step, make sure at least one parallel
    # axis has an even extent so the 2 TensorCores split it evenly.
    n_h = -(-hid // th)
    n_b = -(-bsz // tb)
    if n_h * n_b > 1 and (n_h % 2 == 1) and (n_b % 2 == 1):
        if th % 256 == 0 and hid % (th // 2) == 0:
            th //= 2
        elif tb % 16 == 0 and bsz % (tb // 2) == 0:
            tb //= 2
    return tb, th


# ----------------------------------------------------------------------------
# Wrapper
# ----------------------------------------------------------------------------
def mem_adp_skip_update(inputs, mem, spike, tau_adp, b, tau_m, mask,
                        dt=1.0, isAdapt=1, tb=None, th=None):
    """Pallas implementation of mem_adp_skip_update.forward.

    inputs, mem, spike, b : (batch, hidden) float32
    tau_adp, tau_m, mask  : (1, hidden) (or (hidden,)) float32
    Returns (mem, spike, B, b), each (batch, hidden) float32.
    """
    bsz, hid = mem.shape
    dt = float(dt)
    beta = 1.8 if isAdapt else 0.0

    # Precompute the per-neuron decay factors once per call (O(hidden)) and
    # pack them with the skip mask into a single small param array.
    tau_m = jnp.asarray(tau_m, jnp.float32).reshape(1, hid)
    tau_adp = jnp.asarray(tau_adp, jnp.float32).reshape(1, hid)
    mask = jnp.asarray(mask, jnp.float32).reshape(1, hid)
    alpha = jnp.exp(-dt / tau_m)
    ro = jnp.exp(-dt / tau_adp)
    params = jnp.concatenate([alpha, 1.0 - alpha, ro, 1.0 - ro, mask], axis=0)  # (5, hid)

    vmem_limit, blk_bytes = _vmem_policy()
    tb, th = _pick_tiles(bsz, hid, tb, th, blk_bytes)

    # Hidden axis outermost, batch innermost: the (5, TH) param block stays
    # resident across the batch loop (no re-DMA of params).
    grid = (pl.cdiv(hid, th), pl.cdiv(bsz, tb))

    bh_spec = pl.BlockSpec((tb, th), lambda hi, bi: (bi, hi))      # (B, H) tensors
    param_spec = pl.BlockSpec((5, th), lambda hi, bi: (0, hi))     # packed params

    kernel = functools.partial(_mem_adp_skip_update_kernel, dt=dt, beta=float(beta))
    out_shape = tuple(jax.ShapeDtypeStruct((bsz, hid), jnp.float32) for _ in range(4))

    return pl.pallas_call(
        kernel,
        out_shape=out_shape,
        grid_spec=pltpu.PrefetchScalarGridSpec(
            num_scalar_prefetch=0,
            grid=grid,
            in_specs=[bh_spec,       # inputs
                      bh_spec,       # mem
                      bh_spec,       # spike
                      bh_spec,       # b
                      param_spec],   # packed [alpha, 1-alpha, ro, 1-ro, mask]
            out_specs=[bh_spec, bh_spec, bh_spec, bh_spec],
        ),
        # Recurrent state reuses its input storage when the caller donates it
        # (mem -> mem_out, spike -> spike_out, b -> b_out).
        input_output_aliases={1: 0, 2: 1, 3: 3},
        compiler_params=pltpu.CompilerParams(
            dimension_semantics=("parallel", "parallel"),
            vmem_limit_bytes=vmem_limit),
    )(inputs, mem, spike, b, params)


# Jitted entry points. The donated variant is the intended calling convention
# for the recurrent loop: it makes the in-kernel aliasing actually eliminate
# the defensive copies of mem/spike/b.
_STATIC = ("dt", "isAdapt", "tb", "th")
mem_adp_skip_update_jit = jax.jit(mem_adp_skip_update, static_argnames=_STATIC)
mem_adp_skip_update_donated = jax.jit(mem_adp_skip_update, static_argnames=_STATIC,
                                      donate_argnames=("mem", "spike", "b"))

# TODO(synk): ActFun_adp's surrogate-gradient backward (|mem - B| < lens window)
# is training-only and not implemented here; this kernel covers the forward pass.


# ----------------------------------------------------------------------------
# Reference + self-test
# ----------------------------------------------------------------------------
def _reference(inputs, mem, spike, tau_adp, b, tau_m, mask, dt=1.0, isAdapt=1):
    beta = 1.8 if isAdapt else 0.0
    pre_mem = mem
    alpha = jnp.exp(-1.0 * dt / tau_m)
    ro = jnp.exp(-1.0 * dt / tau_adp)
    b_new = ro * b + (1 - ro) * spike
    bigB = B_J0 + beta * b_new
    mem_new = mem * alpha + (1 - alpha) * R_M * inputs - bigB * spike * dt
    mem_new = jnp.where(mask == 0, pre_mem, mem_new)
    spike_new = (mem_new - bigB > 0).astype(jnp.float32) * mask
    return mem_new, spike_new, bigB, b_new


if __name__ == "__main__":
    key = jax.random.PRNGKey(0)
    batch, hidden = 32, 256   # small, lane-aligned shapes

    k = jax.random.split(key, 8)
    inputs = jax.random.normal(k[0], (batch, hidden), jnp.float32)
    mem = jax.random.normal(k[1], (batch, hidden), jnp.float32)
    spike = (jax.random.uniform(k[2], (batch, hidden)) > 0.5).astype(jnp.float32)
    b = 0.01 * jnp.ones((batch, hidden), jnp.float32)
    tau_m = 20.0 + 5.0 * jnp.abs(jax.random.normal(k[3], (1, hidden), jnp.float32))
    tau_adp = 700.0 + 25.0 * jnp.abs(jax.random.normal(k[4], (1, hidden), jnp.float32))
    mask = (jax.random.uniform(k[5], (1, hidden)) > 0.3).astype(jnp.float32)

    # Reference first (state buffers are donated to the kernel later).
    refs = jax.block_until_ready(
        _reference(inputs, mem, spike, tau_adp, b, tau_m, mask, dt=1.0, isAdapt=1))

    # 1) Force small tiles so the multi-block grid path (grid=(2,4)) is exercised.
    outs = jax.block_until_ready(
        mem_adp_skip_update_jit(inputs, mem, spike, tau_adp, b, tau_m, mask,
                                dt=1.0, isAdapt=1, tb=8, th=128))
    for o, r in zip(outs, refs):
        assert o.shape == r.shape
        assert jnp.allclose(o, r, atol=1e-5, rtol=1e-5)

    # 2) Auto-tiled, donated call (intended recurrent-loop calling convention).
    outs_d = jax.block_until_ready(
        mem_adp_skip_update_donated(inputs, mem, spike, tau_adp, b, tau_m, mask,
                                    dt=1.0, isAdapt=1))
    for o, r in zip(outs_d, refs):
        assert o.shape == r.shape
        assert jnp.allclose(o, r, atol=1e-5, rtol=1e-5)

    print("KERNEL_OK")
</pallas_src>

<mosaic_0001>
module attributes {stable_mosaic.version = 11 : i64} {
  func.func @_mem_adp_skip_update_kernel(%arg0: i32, %arg1: i32, %arg2: memref<8x128xf32, #tpu.memory_space<vmem>>, %arg3: memref<8x128xf32, #tpu.memory_space<vmem>>, %arg4: memref<8x128xf32, #tpu.memory_space<vmem>>, %arg5: memref<8x128xf32, #tpu.memory_space<vmem>>, %arg6: memref<5x128xf32, #tpu.memory_space<vmem>>, %arg7: memref<8x128xf32, #tpu.memory_space<vmem>>, %arg8: memref<8x128xf32, #tpu.memory_space<vmem>>, %arg9: memref<8x128xf32, #tpu.memory_space<vmem>>, %arg10: memref<8x128xf32, #tpu.memory_space<vmem>>) attributes {dimension_semantics = [#tpu.dimension_semantics<parallel>, #tpu.dimension_semantics<parallel>], iteration_bounds = array<i64: 2, 4>, scalar_prefetch = 0 : i64, scratch_operands = 0 : i64, tpu.core_type = #tpu.core_type<tc>, window_params = [{transform_indices = @transform_0, window_bounds = array<i64: 8, 128>}, {transform_indices = @transform_1, window_bounds = array<i64: 8, 128>}, {transform_indices = @transform_2, window_bounds = array<i64: 8, 128>}, {transform_indices = @transform_3, window_bounds = array<i64: 8, 128>}, {transform_indices = @transform_4, window_bounds = array<i64: 5, 128>}, {transform_indices = @transform_5, window_bounds = array<i64: 8, 128>}, {transform_indices = @transform_6, window_bounds = array<i64: 8, 128>}, {transform_indices = @transform_7, window_bounds = array<i64: 8, 128>}, {transform_indices = @transform_8, window_bounds = array<i64: 8, 128>}]} {
    %c0 = arith.constant 0 : index
    %c0_0 = arith.constant 0 : index
    %0 = vector.load %arg2[%c0, %c0_0] : memref<8x128xf32, #tpu.memory_space<vmem>>, vector<8x128xf32>
    %c0_1 = arith.constant 0 : index
    %c0_2 = arith.constant 0 : index
    %1 = vector.load %arg3[%c0_1, %c0_2] : memref<8x128xf32, #tpu.memory_space<vmem>>, vector<8x128xf32>
    %c0_3 = arith.constant 0 : index
    %c0_4 = arith.constant 0 : index
    %2 = vector.load %arg4[%c0_3, %c0_4] : memref<8x128xf32, #tpu.memory_space<vmem>>, vector<8x128xf32>
    %c0_5 = arith.constant 0 : index
    %c0_6 = arith.constant 0 : index
    %3 = vector.load %arg5[%c0_5, %c0_6] : memref<8x128xf32, #tpu.memory_space<vmem>>, vector<8x128xf32>
    %c0_7 = arith.constant 0 : index
    %c0_8 = arith.constant 0 : index
    %4 = vector.load %arg6[%c0_7, %c0_8] : memref<5x128xf32, #tpu.memory_space<vmem>>, vector<5x128xf32>
    %5 = vector.extract_strided_slice %4 {offsets = [0, 0], sizes = [1, 128], strides = [1, 1]} : vector<5x128xf32> to vector<1x128xf32>
    %6 = vector.shape_cast %5 : vector<1x128xf32> to vector<1x128xf32>
    %7 = vector.broadcast %6 : vector<1x128xf32> to vector<8x128xf32>
    %8 = vector.extract_strided_slice %4 {offsets = [1, 0], sizes = [1, 128], strides = [1, 1]} : vector<5x128xf32> to vector<1x128xf32>
    %9 = vector.shape_cast %8 : vector<1x128xf32> to vector<1x128xf32>
    %10 = vector.broadcast %9 : vector<1x128xf32> to vector<8x128xf32>
    %11 = vector.extract_strided_slice %4 {offsets = [2, 0], sizes = [1, 128], strides = [1, 1]} : vector<5x128xf32> to vector<1x128xf32>
    %12 = vector.shape_cast %11 : vector<1x128xf32> to vector<1x128xf32>
    %13 = vector.broadcast %12 : vector<1x128xf32> to vector<8x128xf32>
    %14 = vector.extract_strided_slice %4 {offsets = [3, 0], sizes = [1, 128], strides = [1, 1]} : vector<5x128xf32> to vector<1x128xf32>
    %15 = vector.shape_cast %14 : vector<1x128xf32> to vector<1x128xf32>
    %16 = vector.broadcast %15 : vector<1x128xf32> to vector<8x128xf32>
    %17 = vector.extract_strided_slice %4 {offsets = [4, 0], sizes = [1, 128], strides = [1, 1]} : vector<5x128xf32> to vector<1x128xf32>
    %18 = vector.shape_cast %17 : vector<1x128xf32> to vector<1x128xf32>
    %19 = vector.broadcast %18 : vector<1x128xf32> to vector<8x128xf32>
    %20 = arith.mulf %13, %3 : vector<8x128xf32>
    %21 = arith.mulf %16, %2 : vector<8x128xf32>
    %22 = arith.addf %20, %21 : vector<8x128xf32>
    %cst = arith.constant 1.800000e+00 : f32
    %23 = vector.broadcast %cst : f32 to vector<8x128xf32>
    %24 = arith.mulf %23, %22 : vector<8x128xf32>
    %cst_9 = arith.constant 0.00999999977 : f32
    %25 = vector.broadcast %cst_9 : f32 to vector<8x128xf32>
    %26 = arith.addf %25, %24 : vector<8x128xf32>
    %27 = arith.mulf %1, %7 : vector<8x128xf32>
    %cst_10 = arith.constant 1.000000e+00 : f32
    %28 = vector.broadcast %cst_10 : f32 to vector<8x128xf32>
    %29 = arith.mulf %28, %0 : vector<8x128xf32>
    %30 = arith.mulf %10, %29 : vector<8x128xf32>
    %31 = arith.addf %27, %30 : vector<8x128xf32>
    %cst_11 = arith.constant 1.000000e+00 : f32
    %32 = vector.broadcast %cst_11 : f32 to vector<8x128xf32>
    %33 = arith.mulf %2, %32 : vector<8x128xf32>
    %34 = arith.mulf %26, %33 : vector<8x128xf32>
    %35 = arith.subf %31, %34 : vector<8x128xf32>
    %cst_12 = arith.constant 0.000000e+00 : f32
    %36 = vector.broadcast %cst_12 : f32 to vector<8x128xf32>
    %37 = arith.cmpf oeq, %19, %36 : vector<8x128xf32>
    %38 = arith.select %37, %1, %35 : vector<8x128xi1>, vector<8x128xf32>
    %39 = arith.subf %38, %26 : vector<8x128xf32>
    %cst_13 = arith.constant 0.000000e+00 : f32
    %40 = vector.broadcast %cst_13 : f32 to vector<8x128xf32>
    %41 = arith.cmpf ogt, %39, %40 : vector<8x128xf32>
    %42 = arith.extui %41 : vector<8x128xi1> to vector<8x128xi32>
    %43 = arith.sitofp %42 : vector<8x128xi32> to vector<8x128xf32>
    %44 = arith.mulf %43, %19 : vector<8x128xf32>
    %c0_14 = arith.constant 0 : index
    %c0_15 = arith.constant 0 : index
    %45 = vector.load %arg7[%c0_14, %c0_15] : memref<8x128xf32, #tpu.memory_space<vmem>>, vector<8x128xf32>
    tpu.vector_store %arg7[%c0_14, %c0_15], %38 {strides = array<i32>} : memref<8x128xf32, #tpu.memory_space<vmem>>, vector<8x128xf32>,
    %c0_16 = arith.constant 0 : index
    %c0_17 = arith.constant 0 : index
    %46 = vector.load %arg8[%c0_16, %c0_17] : memref<8x128xf32, #tpu.memory_space<vmem>>, vector<8x128xf32>
    tpu.vector_store %arg8[%c0_16, %c0_17], %44 {strides = array<i32>} : memref<8x128xf32, #tpu.memory_space<vmem>>, vector<8x128xf32>,
    %c0_18 = arith.constant 0 : index
    %c0_19 = arith.constant 0 : index
    %47 = vector.load %arg9[%c0_18, %c0_19] : memref<8x128xf32, #tpu.memory_space<vmem>>, vector<8x128xf32>
    tpu.vector_store %arg9[%c0_18, %c0_19], %26 {strides = array<i32>} : memref<8x128xf32, #tpu.memory_space<vmem>>, vector<8x128xf32>,
    %c0_20 = arith.constant 0 : index
    %c0_21 = arith.constant 0 : index
    %48 = vector.load %arg10[%c0_20, %c0_21] : memref<8x128xf32, #tpu.memory_space<vmem>>, vector<8x128xf32>
    tpu.vector_store %arg10[%c0_20, %c0_21], %22 {strides = array<i32>} : memref<8x128xf32, #tpu.memory_space<vmem>>, vector<8x128xf32>,
    return
  }
  func.func @transform_0(%arg0: i32, %arg1: i32) -> (i32, i32) {
    %c0_i32 = arith.constant 0 : i32
    return %arg1, %arg0 : i32, i32
  }
  func.func @transform_1(%arg0: i32, %arg1: i32) -> (i32, i32) {
    %c0_i32 = arith.constant 0 : i32
    return %arg1, %arg0 : i32, i32
  }
  func.func @transform_2(%arg0: i32, %arg1: i32) -> (i32, i32) {
    %c0_i32 = arith.constant 0 : i32
    return %arg1, %arg0 : i32, i32
  }
  func.func @transform_3(%arg0: i32, %arg1: i32) -> (i32, i32) {
    %c0_i32 = arith.constant 0 : i32
    return %arg1, %arg0 : i32, i32
  }
  func.func @transform_4(%arg0: i32, %arg1: i32) -> (i32, i32) {
    %c0_i32 = arith.constant 0 : i32
    %c0_i32_0 = arith.constant 0 : i32
    return %c0_i32, %arg0 : i32, i32
  }
  func.func @transform_5(%arg0: i32, %arg1: i32) -> (i32, i32) {
    %c0_i32 = arith.constant 0 : i32
    return %arg1, %arg0 : i32, i32
  }
  func.func @transform_6(%arg0: i32, %arg1: i32) -> (i32, i32) {
    %c0_i32 = arith.constant 0 : i32
    return %arg1, %arg0 : i32, i32
  }
  func.func @transform_7(%arg0: i32, %arg1: i32) -> (i32, i32) {
    %c0_i32 = arith.constant 0 : i32
    return %arg1, %arg0 : i32, i32
  }
  func.func @transform_8(%arg0: i32, %arg1: i32) -> (i32, i32) {
    %c0_i32 = arith.constant 0 : i32
    return %arg1, %arg0 : i32, i32
  }
}

</mosaic_0001>

<bundles_post_ra>
// kernel: mem_adp_skip_update.1
= control target key start
LH: loop header
LB: loop body
LE: loop exit
PB: predicated region body
PF: predicated region fallthrough
CT: control target
= control target key end

     0   :  { %s1789_s0 = inlined_call_operand.vmem [shape: f32[32,256], index: 0, kind: input, shape index: {}]   ;;  %s1790_s1 = inlined_call_operand.hbm [shape: f32[32,256], index: 1, kind: input, shape index: {}, may-alias: {1,5}]   ;;  %s1791_s2 = inlined_call_operand.hbm [shape: f32[32,256], index: 2, kind: input, shape index: {}, may-alias: {2,6}]   ;;  %s1792_s3 = inlined_call_operand.hbm [shape: f32[32,256], index: 3, kind: input, shape index: {}, may-alias: {3,8}]   ;;  %s1793_s4 = inlined_call_operand.vmem [shape: f32[5,256], index: 4, kind: input, shape index: {}]   ;;  %s1794_s5 = inlined_call_operand.hbm [shape: f32[32,256], index: 5, kind: output, shape index: {0}, may-alias: {1,5}]   ;;  %s1795_s6 = inlined_call_operand.hbm [shape: f32[32,256], index: 6, kind: output, shape index: {1}, may-alias: {2,6}]   ;;  %s1796_s7 = inlined_call_operand.hbm [shape: f32[32,256], index: 7, kind: output, shape index: {2}]   ;;  %s1797_s8 = inlined_call_operand.hbm [shape: f32[32,256], index: 8, kind: output, shape index: {3}, may-alias: {3,8}]  }
   0x1   :  { %1814 = sst [smem:[#allocation27_spill]] %s1791_s2 }
   0x2   :  { %1815 = sst [smem:[#allocation28_spill]] %s1794_s5 }
   0x3   :  { %1816 = sst [smem:[#allocation29_spill]] %s1795_s6 }
   0x4   :  { %1817 = sst [smem:[#allocation30_spill]] %s1796_s7 }
   0x5   :  { %14 = vsyncpa [#allocation3], 0 }
   0x6   :  { %16 = vsyncpa [#allocation3 + $0x1], 0 }
   0x7   :  { %17 = vsyncpa [#allocation6], 0 }
   0x8   :  { %19 = vsyncpa [#allocation6 + $0x1], 0 }
   0x9   :  { %20 = vsyncpa [#allocation4], 0 }
   0xa   :  { %22 = vsyncpa [#allocation4 + $0x1], 0 }
   0xb   :  { %23 = vsyncpa [#allocation10], 0 }
   0xc   :  { %25 = vsyncpa [#allocation10 + $0x1], 0 }
   0xd   :  { %26 = vsyncpa [#allocation13], 0 }
   0xe   :  { %28 = vsyncpa [#allocation13 + $0x1], 0  ;;  %s1365_s27 = smov 0   ;;  %s1367_s28 = smov 0  }
   0xf   :  { %s1369_s29 = smov 0   ;;  %s1371_s30 = smov 0  }
  0x10   :  { %s1373_s9 = smov 0   ;;  %s1375_s10 = smov 0  }
  0x11   :  { %s1377_s11 = smov 0   ;;  %s1379_s12 = smov 0  }
  0x12 LB: > { %1818 = sst [smem:[#allocation19_spill]] %s1282_s27  ;;  %s1406_s13 = sadd.s32 4294967295, %s1310_s12   ;;  %s1310_s12 = sphi %s1379_s12, %s34_s12   ;;  %s1306_s11 = sphi %s1377_s11, %s1856_s11   ;;  %s1302_s10 = sphi %s1375_s10, %s1855_s10   ;;  %s1298_s9 = sphi %s1373_s9, %s1854_s9   ;;  %s1294_s30 = sphi %s1371_s30, %s1853_s30   ;;  %s1290_s29 = sphi %s1369_s29, %s1859_s29   ;;  %s1286_s28 = sphi %s1367_s28, %s1858_s28   ;;  %s1282_s27 = sphi %s1365_s27, %s1857_s27  }
  0x13   : > { %1819 = sst [smem:[#allocation20_spill]] %s1302_s10  ;;  %s1801_s14 = sadd.s32 4294967294, %s1310_s12  }
  0x14   : > { %1820 = sst [smem:[#allocation21_spill]] %s1306_s11  ;;  %s43_s15 = sadd.s32 1, %s1302_s10 }
  0x15   : > { %1821 = sst [smem:[#allocation22_spill]] %s1310_s12  ;;  %s46_s16 = sadd.s32 1, %s1306_s11 }
  0x16   : > { %p44_p0 = scmp.ge.s32.totalorder %s43_s15, 4  ;;  %s83_s17 = sadd.s32 1, %s1290_s29 }
  0x17   : > { %p90_p1 = scmp.ne.s32.totalorder %s1290_s29, %s1286_s28  ;;  %p91_p2 = scmp.eq.s32.totalorder %s1310_s12, 0 }
  0x18   : > { %s1861_s15 = smov (%p44_p0, %s43_s15), 0  ;;  %s1863_s16 = smov (!%p44_p0, %s46_s16), %s1306_s11 }
  0x19   : > { %1822 = sst [smem:[#allocation23_spill]] %s1861_s15  ;;  %s78_s18 = ssub.s32 %s1302_s10, %s1861_s15 }
  0x1a   : > { %p1420_p3 = por %p91_p2, %p90_p1  ;;  %p48_p4 = scmp.ge.s32.totalorder %s1863_s16, 2 }
  0x1b   : > { %p96_p5 = scmp.ne.s32.totalorder %s1286_s28, %s1282_s27  ;;  %p97_p6 = scmp.eq.s32.totalorder %s1406_s13, 0 }
  0x1c   : > { %p204_p7 = scmp.eq.s32.totalorder %s1406_s13, 7  ;;  %s1865_s16 = smov (%p48_p4, %s1863_s16), 0 }
  0x1d   : > { %1824 = sst [smem:[#allocation24_spill]] %s1865_s16  ;;  %p1430_p8 = por %p97_p6, %p96_p5 }
  0x1e   : > { %p1434_p9 = por %p204_p7, %p90_p1  ;;  %s79_s22 = ssub.s32 %s1306_s11, %s1865_s16 }
  0x1f   : > { %s1825_s20 = scalar_select %p1430_p8, 1, 0 }
  0x20   : > { %s1826_s21 = scalar_select %p1434_p9, 1, 0 }
  0x21   : > { %p210_p10 = scmp.eq.s32.totalorder %s1801_s14, 7  ;;  %s80_s23 = sor.u32 %s79_s22, %s78_s18 }
  0x22   : > { %p81_p11 = scmp.eq.s32.totalorder %s80_s23, 0  ;;  %p959_p13 = scmp.lt.s32.totalorder %s1310_s12, 8 }
  0x23   : > { %p1442_p12 = por %p210_p10, %p96_p5  ;;  %s1803_s25 = sand.u32 1, %s1290_s29  }
  0x24   : > { %s1449_s26 = scalar_select %p81_p11, %s1290_s29, %s83_s17  }
  0x25   : > { %s1827_s24 = scalar_select %p1442_p12, 1, 0 }
  0x26   : > { %1829 = sst [smem:[#allocation26_spill]] %s1449_s26  ;;  %s1453_s15 = sshll.u32 %s1803_s25, 3 }
  0x27   : > { %1828 = sst [smem:[#allocation25_spill]] %s1827_s24  ;;  %s888_s27 = sshll.u32 %s1302_s10, 1 }
  0x28   : > { %s334_s16 = sadd.s32 %s1306_s11, %s888_s27  ;;  %p1459_p0 = pnand %p959_p13, %p1420_p3 }
  0x29   : > { %s1463_s18 = sshll.u32 %s334_s16, 7  ;;  %s345_s22 = sand.u32 1, %s1310_s12  }
  0x2a   : > { %s1830_s14 = scalar_select %p1459_p0, 1, 0 }
  0x2b   : > { %s1831_s2 = sld [smem:[#allocation27_spill]]  ;;  %s349_s27 = scalar_lea.vmem [#allocation5], %s1453_s15 }
  0x2c   : > { %s358_s19 = sshll.u32 %s349_s27, 4  ;;  %s1477_s25 = scalar_lea.sflag [#allocation6], %s345_s22  ;;  %s1474_s19 = int_to_ptr.vmem [resolvable:$true] %s358_s19 }
  0x2d   : > { %p1483_p4 = pneg %p1459_p0 }
  0x31   : > { %s1470_s17 = scalar_lea.hbm %s1831_s2, %s1463_s18  ;;  %s1031_s27 = scalar_lea.hbm %s1831_s2, 1024 }
  0x32   : > { %s1026_s16 = scalar_lea.hbm %s1470_s17, 128  ;;  %p1032_p7 = scmp.lt.u32.totalorder %s1470_s17, %s1831_s2 }
  0x33   : > { %p1027_p3 = scmp.ne.s32.totalorder %s1470_s17, %s1026_s16  ;;  %p1033_p10 = scmp.lt.u32.totalorder %s1031_s27, %s1026_s16 }
  0x34   : > { %p1035_p13 = scmp.lt.u32.totalorder %s1026_s16, %s1470_s17 }
  0x35   : > { %p1029_p5 = pnand %p1483_p4, %p1027_p3  ;;  %p1034_p11 = por %p1033_p10, %p1032_p7 }
  0x37   : > { %p1030_p6 = pneg %p1029_p5  ;;  %p1036_p1 = por %p1035_p13, %p1034_p11 }
  0x39   : > { %p1037_p2 = pnand %p1036_p1, %p1030_p6 }
  0x3b   : > { %1040 = shalt.err (!%p1037_p2)
}
  0x3c   : > { %s1041_s22 = scalar_lea.vmem %s1474_s19, 128  ;;  %s1312_s24 = smov [#allocation5]  }
  0x3d   : > { %p1042_p3 = scmp.ne.s32.totalorder %s1474_s19, %s1041_s22  ;;  %s1046_s23 = sshll.u32 %s1312_s24, 4  ;;  %s1047_s23 = int_to_ptr.vmem [resolvable:$false] %s1046_s23 }
  0x3e   : > { %s1048_s10 = scalar_lea.vmem %s1047_s23, 256  ;;  %p1049_p9 = scmp.lt.s32.totalorder %s1474_s19, %s1047_s23 }
  0x3f   : > { %p1044_p5 = pnand %p1042_p3, %p1483_p4  ;;  %p1050_p8 = scmp.lt.s32.totalorder %s1048_s10, %s1041_s22 }
  0x41   : > { %p1045_p12 = pneg %p1044_p5  ;;  %p1051_p7 = por %p1050_p8, %p1049_p9 }
  0x43   : > { %p1052_p10 = pnand %p1051_p7, %p1045_p12 }
  0x45   : > { %1055 = shalt.err (!%p1052_p10)
}
  0x46   : > { %942 = dma.hbm_to_vmem [thread:$0]  (!%p1459_p0), %s1470_s17, 128, %s1474_s19, %s1477_s25  }
  0x47   : > { %p1833_p1 = scmp.lt.s32.totalorder %s1310_s12, 9  ;;  %p1834_p2 = scmp.ge.s32.totalorder %s1310_s12, 1 }
  0x48   : > { %s1519_s22 = scalar_lea.hbm %s1790_s1, %s1463_s18  ;;  %s329_s24 = scalar_lea.vmem [#allocation2], %s1453_s15 }
  0x49   : > { %p1511_p6 = pnand %p1834_p2, %p1833_p1  ;;  %s338_s23 = sshll.u32 %s329_s24, 4  ;;  %s1522_s23 = int_to_ptr.vmem [resolvable:$true] %s338_s23 }
  0x4a   : > { %s1528_s10 = scalar_lea.hbm %s1792_s3, %s1463_s18  ;;  %s1836_s2 = sand.u32 1, %s1290_s29  }
  0x4b   : > { %s1835_s26 = scalar_select %p1511_p6, 1, 0 }
  0x4c   : > { %s326_s12 = scalar_lea.sflag [#allocation3], %s1836_s2  ;;  %s1056_s7 = scalar_lea.hbm %s1519_s22, 128 }
  0x4d   : > { %p1057_p8 = scmp.ne.s32.totalorder %s1519_s22, %s1056_s7  ;;  %s1061_s6 = scalar_lea.hbm %s1790_s1, 1024 }
  0x4e   : > { %p1062_p11 = scmp.lt.u32.totalorder %s1519_s22, %s1790_s1  ;;  %p1063_p13 = scmp.lt.u32.totalorder %s1061_s6, %s1056_s7 }
  0x4f   : > { %p1059_p9 = pnand %p1057_p8, %p1483_p4  ;;  %p1065_p5 = scmp.lt.u32.totalorder %s1056_s7, %s1519_s22 }
  0x50   : > { %p1064_p3 = por %p1063_p13, %p1062_p11 }
  0x51   : > { %p1060_p12 = pneg %p1059_p9 }
  0x52   : > { %p1066_p7 = por %p1065_p5, %p1064_p3 }
  0x54   : > { %p1067_p10 = pnand %p1066_p7, %p1060_p12 }
  0x56   : > { %1070 = shalt.err (!%p1067_p10)
}
  0x57   : > { %s1071_s2 = scalar_lea.vmem %s1522_s23, 128  ;;  %s1313_s18 = smov [#allocation2]  }
  0x58   : > { %p1072_p1 = scmp.ne.s32.totalorder %s1522_s23, %s1071_s2  ;;  %s1076_s17 = sshll.u32 %s1313_s18, 4  ;;  %s1077_s17 = int_to_ptr.vmem [resolvable:$false] %s1076_s17 }
  0x59   : > { %s1078_s5 = scalar_lea.vmem %s1077_s17, 256  ;;  %p1079_p9 = scmp.lt.s32.totalorder %s1522_s23, %s1077_s17 }
  0x5a   : > { %p1074_p2 = pnand %p1072_p1, %p1483_p4  ;;  %p1080_p6 = scmp.lt.s32.totalorder %s1078_s5, %s1071_s2 }
  0x5c   : > { %p1075_p8 = pneg %p1074_p2  ;;  %p1081_p11 = por %p1080_p6, %p1079_p9 }
  0x5e   : > { %p1082_p13 = pnand %p1081_p11, %p1075_p8 }
  0x60   : > { %1085 = shalt.err (!%p1082_p13)
}
  0x61   : > { %939 = dma.hbm_to_vmem [thread:$0]  (!%p1459_p0), %s1519_s22, 128, %s1522_s23, %s326_s12  }
  0x62   : > { %s369_s6 = scalar_lea.vmem [#allocation7], %s1453_s15  ;;  %s1086_s19 = scalar_lea.hbm %s1528_s10, 128 }
  0x63   : > { %s378_s7 = sshll.u32 %s369_s6, 4  ;;  %p1087_p12 = scmp.ne.s32.totalorder %s1528_s10, %s1086_s19  ;;  %s379_s7 = int_to_ptr.vmem [resolvable:$true] %s378_s7 }
  0x64   : > { %s1091_s24 = scalar_lea.hbm %s1792_s3, 1024  ;;  %p1092_p5 = scmp.lt.u32.totalorder %s1528_s10, %s1792_s3 }
  0x65   : > { %p1089_p6 = pnand %p1087_p12, %p1483_p4  ;;  %p1093_p7 = scmp.lt.u32.totalorder %s1091_s24, %s1086_s19 }
  0x66   : > { %p1095_p1 = scmp.lt.u32.totalorder %s1086_s19, %s1528_s10 }
  0x67   : > { %p1090_p3 = pneg %p1089_p6  ;;  %p1094_p10 = por %p1093_p7, %p1092_p5 }
  0x69   : > { %p1096_p2 = por %p1095_p1, %p1094_p10 }
  0x6b   : > { %p1097_p8 = pnand %p1096_p2, %p1090_p3 }
  0x6d   : > { %1100 = shalt.err (!%p1097_p8)
}
  0x6e   : > { %s1101_s12 = scalar_lea.vmem %s379_s7, 128  ;;  %s1314_s15 = smov [#allocation7]  }
  0x6f   : > { %p1102_p9 = scmp.ne.s32.totalorder %s379_s7, %s1101_s12  ;;  %s1106_s22 = sshll.u32 %s1314_s15, 4  ;;  %s1107_s22 = int_to_ptr.vmem [resolvable:$false] %s1106_s22 }
  0x70   : > { %s1108_s23 = scalar_lea.vmem %s1107_s22, 256  ;;  %p1109_p12 = scmp.lt.s32.totalorder %s379_s7, %s1107_s22 }
  0x71   : > { %p1104_p11 = pnand %p1102_p9, %p1483_p4  ;;  %p1110_p6 = scmp.lt.s32.totalorder %s1108_s23, %s1101_s12 }
  0x73   : > { %p1105_p13 = pneg %p1104_p11  ;;  %p1111_p0 = por %p1110_p6, %p1109_p12 }
  0x75   : > { %p1112_p5 = pnand %p1111_p0, %p1105_p13 }
  0x77   : > { %1115 = shalt.err (!%p1112_p5)
}
  0x78   : > { %p1837_p7 = scmp.ne.s32.totalorder %s1830_s14, 0  ;;  %p1838_p3 = scmp.ne.s32.totalorder %s1835_s26, 0 }
  0x79   : > { %s1575_s11 = sand.u32 (!%p1838_p3), 1, %s1286_s28   ;;  %p1839_p0 = scmp.ne.s32.totalorder (!%p1838_p3), %s1825_s20, 0 }
  0x7a   : > { %945 = dma.hbm_to_vmem [thread:$0]  (!%p1837_p7), %s1528_s10, 128, %s379_s7, %s1477_s25  }
  0x7b   : > { %394 = sbr.rel (%p1838_p3) target bundleno = 242 (0xf2), region = 40  ;;  %s1578_s17 = sshll.u32 (!%p1838_p3), %s1575_s11, 3 }
  0x7c   : > { %s397_s5 = scalar_lea.sflag (!%p1838_p3), [#allocation3], %s1575_s11  ;;  %s400_s6 = scalar_lea.vmem (!%p1838_p3), [#allocation2], %s1578_s17 }
  0x82   : > { %1261 = dma.done.wait (%p1839_p0), %s397_s5, 128  }
  0x83   : > { %1263 = vsyncadd (%p1839_p0), %s397_s5, 4294967168  ;;  %s405_s14 = sand.u32 1, %s1406_s13   ;;  %s409_s26 = scalar_lea.vmem [#allocation5], %s1578_s17 }
  0x84   : > { %s406_s25 = scalar_lea.sflag [#allocation6], %s405_s14 }
  0x85   : > { %1265 = dma.done.wait (%p1839_p0), %s406_s25, 256  }
  0x86   : > { %1267 = vsyncadd (%p1839_p0), %s406_s25, 4294967040  ;;  %v505_v0 = vlaneseq  ;;  %p488_p4 = scmp.lt.s32.totalorder %s1294_s30, 3  ;;  %p490_p10 = scmp.lt.s32.totalorder %s1298_s9, 1  ;;  %v502_v6 = vld [vmem:[%s409_s26] sm:$0xff]  ;;  %v501_v14 = vld [vmem:[%s400_s6] sm:$0xff] }
  0x87   : > { %s418_s23 = scalar_lea.vmem [#allocation7], %s1578_s17  ;;  %s487_s5 = scalar_lea.vmem [#allocation12], %s1578_s17 }
  0x88   : > { %v506_v1 = vshrl.u32 %v505_v0, 7  ;;  %s489_s10 = scalar_select %p488_p4, %s1294_s30, 3  ;;  %v503_v7 = vld [vmem:[%s418_s23] sm:$0xff] }
  0x89   : > { %s491_s7 = scalar_select %p490_p10, %s1298_s9, 1 }
  0x8a   : > { %s904_s19 = sshll.u32 %s489_s10, 1  ;;  %v507_v2 = vsub.s32 0, %v506_v1  ;;  %v511_v3 = vsub.s32 1, %v506_v1  ;;  %v515_v4 = vsub.s32 2, %v506_v1  ;;  %v519_v5 = vsub.s32 3, %v506_v1  ;;  %s622_s25 = sshll.u32 %s487_s5, 4  ;;  %s1609_s25 = int_to_ptr.vmem [resolvable:$true] %s622_s25 }
  0x8b   : > { %s493_s16 = sadd.s32 %s904_s19, %s491_s7  ;;  %s906_s20 = sshll.u32 %s491_s7, 3  ;;  %v523_v17 = vsub.s32 4, %v506_v1 }
  0x8c   : > { %s905_s27 = sshll.u32 %s493_s16, 3  ;;  %s499_s18 = scalar_lea.vmem %s1793_s4, %s906_s20 }
  0x8d   : > { %s495_s22 = scalar_lea.vmem %s1789_s0, %s905_s27  ;;  %v504_v8 = vld [vmem:[%s499_s18] sm:$0x1f]  ;;  %s912_s26 = sshll.u32 %s1294_s30, 1 }
  0x8e   : > { %v508_v9 = vrot.slane %v504_v8, %v507_v2  ;;  %v512_v10 = vrot.slane %v504_v8, %v511_v3  ;;  %v516_v11 = vrot.slane %v504_v8, %v515_v4  ;;  %v520_v12 = vrot.slane %v504_v8, %v519_v5  ;;  %v500_v13 = vld [vmem:[%s495_s22] sm:$0xff]  ;;  %s573_s10 = sadd.s32 %s1298_s9, %s912_s26  ;;  %s466_s7 = scalar_lea.vmem [#allocation8], %s1578_s17 }
  0x8f   : > { %s1612_s6 = sshll.u32 %s573_s10, 7  ;;  %v1614_v22 = vrot.slane %v504_v8, %v523_v17  ;;  %s1621_s19 = sshll.u32 %s466_s7, 4  ;;  %s1651_s19 = int_to_ptr.vmem [resolvable:$true] %s1621_s19 }
  0x90   : > { %v525_v15 = vmul.f32 %v516_v11, %v503_v7  ;;  %v526_v16 = vmul.f32 %v520_v12, %v502_v6  ;;  %v530_v19 = vmul.f32 %v508_v9, %v501_v14  ;;  %v531_v20 = vmul.f32 %v512_v10, %v500_v13  ;;  %s620_s20 = scalar_lea.hbm %s1797_s8, %s1612_s6  ;;  %s562_s9 = scalar_lea.sflag [#allocation13], %s1575_s11 }
  0x91   : > { %s1116_s27 = scalar_lea.vmem %s1609_s25, 128  ;;  %p1840_p2 = scmp.ne.s32.totalorder %s1826_s21, 0 }
  0x92   : > { %v527_v18 = vadd.f32 %v526_v16, %v525_v15  ;;  %v532_v24 = vadd.f32 %v531_v20, %v530_v19  ;;  %p1117_p1 = scmp.ne.s32.totalorder %s1609_s25, %s1116_s27  ;;  %s1315_s24 = smov [#allocation12]  }
  0x93   : > { %s1120_s2 = sshll.u32 %s1315_s24, 4  ;;  %s1121_s2 = int_to_ptr.vmem [resolvable:$false] %s1120_s2 }
  0x94   : > { %v528_v21 = vmul.f32 1.8, %v527_v18  ;;  %545 = vst [vmem:[%s487_s5] sm:$0xff] %v527_v18  ;;  %p1118_p8 = pnand %p1117_p1, %p1840_p2  ;;  %s1122_s18 = scalar_lea.vmem %s1121_s2, 256 }
  0x95   : > { %p1123_p11 = scmp.lt.s32.totalorder %s1609_s25, %s1121_s2  ;;  %p1124_p13 = scmp.lt.s32.totalorder %s1122_s18, %s1116_s27 }
  0x96   : > { %v1616_v23 = vadd.f32 0.01, %v528_v21  ;;  %p1119_p9 = pneg %p1118_p8 }
  0x97   : > { %p1125_p12 = por %p1124_p13, %p1123_p11 }
  0x99   : > { %p1126_p6 = pnand %p1125_p12, %p1119_p9 }
  0x9b   : > { %1129 = shalt.err (!%p1126_p6)
}
  0x9c   : > { %s1130_s12 = scalar_lea.hbm %s620_s20, 128  ;;  %s1134_s23 = scalar_lea.hbm %s1797_s8, 1024 }
  0x9d   : > { %p1131_p5 = scmp.ne.s32.totalorder %s620_s20, %s1130_s12  ;;  %p1135_p0 = scmp.lt.u32.totalorder %s620_s20, %s1797_s8 }
  0x9e   : > { %p1136_p4 = scmp.lt.u32.totalorder %s1134_s23, %s1130_s12  ;;  %p1138_p1 = scmp.lt.u32.totalorder %s1130_s12, %s620_s20 }
  0x9f   : > { %p1132_p7 = pnand %p1131_p5, %p1840_p2 }
  0xa0   : > { %p1137_p10 = por %p1136_p4, %p1135_p0 }
  0xa1   : > { %p1133_p3 = pneg %p1132_p7 }
  0xa2   : > { %p1139_p8 = por %p1138_p1, %p1137_p10 }
  0xa4   : > { %p1140_p9 = pnand %p1139_p8, %p1133_p3 }
  0xa6   : > { %1143 = shalt.err (!%p1140_p9)
}
  0xa7   : > { %931 = dma.vmem_to_hbm [thread:$0]  (%p1840_p2), %s1609_s25, 128, %s620_s20, %s562_s9   ;;  %v533_v25 = vmul.f32 %v1616_v23, %v502_v6  ;;  %vm535_vm0 = vcmp.eq.f32.partialorder %v1614_v22, 0.0 }
  0xa8   : > { %s480_s10 = scalar_lea.vmem [#allocation11], %s1578_s17  ;;  %s1841_s27 = sld [smem:[#allocation28_spill]] }
  0xa9   : > { %544 = vst [vmem:[%s480_s10] sm:$0xff] %v1616_v23  ;;  %v534_v26 = vsub.f32 %v532_v24, %v533_v25  ;;  %s473_s25 = scalar_lea.vmem [#allocation9], %s1578_s17  ;;  %s547_s9 = scalar_lea.sflag [#allocation4], %s1575_s11 }
  0xaa   : > { %s1663_s20 = sshll.u32 %s473_s25, 4  ;;  %s1144_s18 = scalar_lea.vmem %s1651_s19, 128  ;;  %s1692_s20 = int_to_ptr.vmem [resolvable:$true] %s1663_s20 }
  0xab   : > { %v536_v27 = vsel %vm535_vm0, %v501_v14, %v534_v26  ;;  %p1145_p11 = scmp.ne.s32.totalorder %s1651_s19, %s1144_s18  ;;  %s1316_s12 = smov [#allocation8]  }
  0xac   : > { %v537_v28 = vsub.f32 %v536_v27, %v1616_v23  ;;  %542 = vst [vmem:[%s466_s7] sm:$0xff] %v536_v27  ;;  %s1148_s15 = sshll.u32 %s1316_s12, 4  ;;  %s1149_s15 = int_to_ptr.vmem [resolvable:$false] %s1148_s15 }
  0xad   : > { %p1146_p13 = pnand %p1145_p11, %p1840_p2  ;;  %s1150_s22 = scalar_lea.vmem %s1149_s15, 256 }
  0xae   : > { %s1842_s24 = smov %s1841_s27  ;;  %s1657_s2 = scalar_lea.hbm %s1841_s27, %s1612_s6 }
  0xaf   : > { %p1147_p12 = pneg %p1146_p13  ;;  %p1151_p6 = scmp.lt.s32.totalorder %s1651_s19, %s1149_s15 }
  0xb0   : > { %p1152_p5 = scmp.lt.s32.totalorder %s1150_s22, %s1144_s18 }
  0xb2   : > { %p1153_p7 = por %p1152_p5, %p1151_p6 }
  0xb4   : > { %p1154_p3 = pnand %p1153_p7, %p1147_p12 }
  0xb6   : > { %1157 = shalt.err (!%p1154_p3)
}
  0xb7   : > { %s1158_s11 = scalar_lea.hbm %s1657_s2, 128  ;;  %s1162_s5 = scalar_lea.hbm %s1842_s24, 1024 }
  0xb8   : > { %p1159_p0 = scmp.ne.s32.totalorder %s1657_s2, %s1158_s11  ;;  %p1163_p1 = scmp.lt.u32.totalorder %s1657_s2, %s1842_s24 }
  0xb9   : > { %p1164_p8 = scmp.lt.u32.totalorder %s1162_s5, %s1158_s11  ;;  %p1166_p11 = scmp.lt.u32.totalorder %s1158_s11, %s1657_s2 }
  0xba   : > { %p1160_p4 = pnand %p1159_p0, %p1840_p2 }
  0xbb   : > { %p1165_p9 = por %p1164_p8, %p1163_p1 }
  0xbc   : > { %p1161_p10 = pneg %p1160_p4 }
  0xbd   : > { %p1167_p13 = por %p1166_p11, %p1165_p9 }
  0xbf   : > { %p1168_p12 = pnand %p1167_p13, %p1161_p10 }
  0xc1   : > { %1171 = shalt.err (!%p1168_p12)
}
  0xc2   : > { %928 = dma.vmem_to_hbm [thread:$0]  (%p1840_p2), %s1651_s19, 128, %s1657_s2, %s547_s9   ;;  %vm538_vm1 = vcmp.gt.f32.partialorder %v537_v28, 0.0  ;;  %v1317_v29 = vmov 0.0  }
  0xc3   : > { %s607_s16 = sshll.u32 %s480_s10, 4  ;;  %v907_v30 = vsel %vm538_vm1, 1.0, %v1317_v29  ;;  %s1843_s12 = sld [smem:[#allocation29_spill]]  ;;  %s1701_s16 = int_to_ptr.vmem [resolvable:$true] %s607_s16 }
  0xc4   : > { %v541_v31 = vmul.f32 %v907_v30, %v1614_v22  ;;  %s1845_s9 = sld [smem:[#allocation30_spill]]  ;;  %s1713_s11 = scalar_lea.sflag [#allocation10], %s405_s14 }
  0xc5   : > { %s1172_s23 = scalar_lea.vmem %s1692_s20, 128  ;;  %s1318_s5 = smov [#allocation9]  }
  0xc6   : > { %543 = vst [vmem:[%s473_s25] sm:$0xff] %v541_v31  ;;  %p1173_p6 = scmp.ne.s32.totalorder %s1692_s20, %s1172_s23  ;;  %s1176_s26 = sshll.u32 %s1318_s5, 4  ;;  %s1177_s26 = int_to_ptr.vmem [resolvable:$false] %s1176_s26 }
  0xc7   : > { %s1178_s30 = scalar_lea.vmem %s1177_s26, 256  ;;  %p1179_p3 = scmp.lt.s32.totalorder %s1692_s20, %s1177_s26 }
  0xc8   : > { %p1174_p5 = pnand %p1173_p6, %p1840_p2  ;;  %p1180_p0 = scmp.lt.s32.totalorder %s1178_s30, %s1172_s23 }
  0xc9   : > { %s1844_s15 = smov %s1843_s12  ;;  %s1699_s22 = scalar_lea.hbm %s1843_s12, %s1612_s6 }
  0xca   : > { %s1846_s7 = smov %s1845_s9  ;;  %s1707_s10 = scalar_lea.hbm %s1845_s9, %s1612_s6 }
  0xcb   : > { %p1175_p7 = pneg %p1174_p5  ;;  %p1181_p4 = por %p1180_p0, %p1179_p3 }
  0xcd   : > { %p1182_p10 = pnand %p1181_p4, %p1175_p7 }
  0xcf   : > { %1185 = shalt.err (!%p1182_p10)
}
  0xd0   : > { %s1186_s13 = scalar_lea.hbm %s1699_s22, 128  ;;  %s1190_s6 = scalar_lea.hbm %s1844_s15, 1024 }
  0xd1   : > { %p1187_p1 = scmp.ne.s32.totalorder %s1699_s22, %s1186_s13  ;;  %p1191_p11 = scmp.lt.u32.totalorder %s1699_s22, %s1844_s15 }
  0xd2   : > { %p1192_p13 = scmp.lt.u32.totalorder %s1190_s6, %s1186_s13  ;;  %p1194_p6 = scmp.lt.u32.totalorder %s1186_s13, %s1699_s22 }
  0xd3   : > { %p1188_p8 = pnand %p1187_p1, %p1840_p2 }
  0xd4   : > { %p1193_p12 = por %p1192_p13, %p1191_p11 }
  0xd5   : > { %p1189_p9 = pneg %p1188_p8 }
  0xd6   : > { %p1195_p5 = por %p1194_p6, %p1193_p12 }
  0xd8   : > { %p1196_p7 = pnand %p1195_p5, %p1189_p9 }
  0xda   : > { %1199 = shalt.err (!%p1196_p7)
}
  0xdb   : > { %929 = dma.vmem_to_hbm [thread:$0]  (%p1840_p2), %s1692_s20, 128, %s1699_s22, %s1713_s11  }
  0xdc   : > { %s1200_s18 = scalar_lea.vmem %s1701_s16, 128  ;;  %s1319_s12 = smov [#allocation11]  }
  0xdd   : > { %p1201_p3 = scmp.ne.s32.totalorder %s1701_s16, %s1200_s18  ;;  %s1204_s19 = sshll.u32 %s1319_s12, 4  ;;  %s1205_s19 = int_to_ptr.vmem [resolvable:$false] %s1204_s19 }
  0xde   : > { %s1206_s2 = scalar_lea.vmem %s1205_s19, 256  ;;  %p1207_p10 = scmp.lt.s32.totalorder %s1701_s16, %s1205_s19 }
  0xdf   : > { %p1202_p0 = pnand %p1201_p3, %p1840_p2  ;;  %p1208_p1 = scmp.lt.s32.totalorder %s1206_s2, %s1200_s18 }
  0xe1   : > { %p1203_p4 = pneg %p1202_p0  ;;  %p1209_p8 = por %p1208_p1, %p1207_p10 }
  0xe3   : > { %p1210_p9 = pnand %p1209_p8, %p1203_p4 }
  0xe5   : > { %1213 = shalt.err (!%p1210_p9)
}
  0xe6   : > { %s1214_s20 = scalar_lea.hbm %s1707_s10, 128  ;;  %s1218_s23 = scalar_lea.hbm %s1846_s7, 1024 }
  0xe7   : > { %p1215_p11 = scmp.ne.s32.totalorder %s1707_s10, %s1214_s20  ;;  %p1219_p6 = scmp.lt.u32.totalorder %s1707_s10, %s1846_s7 }
  0xe8   : > { %p1220_p5 = scmp.lt.u32.totalorder %s1218_s23, %s1214_s20  ;;  %p1222_p3 = scmp.lt.u32.totalorder %s1214_s20, %s1707_s10 }
  0xe9   : > { %p1216_p13 = pnand %p1215_p11, %p1840_p2 }
  0xea   : > { %p1221_p7 = por %p1220_p5, %p1219_p6 }
  0xeb   : > { %p1217_p12 = pneg %p1216_p13 }
  0xec   : > { %p1223_p0 = por %p1222_p3, %p1221_p7 }
  0xee   : > { %p1224_p4 = pnand %p1223_p0, %p1217_p12 }
  0xf0   : > { %1227 = shalt.err (!%p1224_p4)
}
  0xf1   : > { %930 = dma.vmem_to_hbm [thread:$0]  (%p1840_p2), %s1701_s16, 128, %s1707_s10, %s1713_s11  }
  0xf2 PF: > { %s1847_s30 = sld [smem:[#allocation22_spill]]  ;;  %s1848_s13 = sld [smem:[#allocation19_spill]] }
  0xf3   : > { %s1849_s17 = sld [smem:[#allocation25_spill]] }
  0xf8   : > { %p960_p10 = scmp.ge.s32.totalorder %s1847_s30, 2  ;;  %s634_s14 = sand.u32 1, %s1848_s13  }
  0xf9   : > { %p1850_p1 = scmp.ne.s32.totalorder %s1849_s17, 0  ;;  %s635_s6 = scalar_lea.sflag [#allocation4], %s634_s14 }
  0xfb   : > { %p947_p8 = pnand %p960_p10, %p1850_p1 }
  0xfd   : > { %1269 = dma.done.wait (!%p947_p8), %s635_s6, 128  }
  0xfe   : > { %1271 = vsyncadd (!%p947_p8), %s635_s6, 4294967168  ;;  %s1851_s25 = sadd.s32 4294967294, %s1847_s30  }
  0xff   : > { %s643_s27 = sand.u32 1, %s1851_s25  }
 0x100   : > { %s644_s18 = scalar_lea.sflag [#allocation10], %s643_s27 }
 0x101   : > { %1273 = dma.done.wait (!%p947_p8), %s644_s18, 256  }
 0x102   : > { %1275 = vsyncadd (!%p947_p8), %s644_s18, 4294967040  ;;  %s662_s21 = scalar_lea.sflag [#allocation13], %s634_s14 }
 0x103   : > { %1277 = dma.done.wait (!%p947_p8), %s662_s21, 128  }
 0x104   : > { %1279 = vsyncadd (!%p947_p8), %s662_s21, 4294967168  ;;  %s34_s12 = sadd.s32 1, %s1847_s30   ;;  %s1852_s16 = sld [smem:[#allocation26_spill]] }
 0x105   : > { %p31_p2 = scmp.ge.s32.totalorder %s34_s12, 10   ;;  %s1853_s30 = sld [smem:[#allocation20_spill]] }
 0x106   : > { %s1854_s9 = sld [smem:[#allocation21_spill]]  ;;  %s1855_s10 = sld [smem:[#allocation23_spill]] }
 0x107   : > { %s1856_s11 = sld [smem:[#allocation24_spill]]  ;;  %s1857_s27 = smov %s1286_s28 }
 0x108   : > { %s1858_s28 = smov %s1290_s29  ;;  %33 = sbr.rel (!%p31_p2) target bundleno = 18 (0x12), region = 164 }
 0x10a   : > { %s1859_s29 = smov %s1852_s16 }
 0x10f   :  { %667 = vsyncpa [#allocation3], 1 }
 0x110   :  { %669 = vsyncpa [#allocation3 + $0x1], 1 }
 0x111   :  { %670 = vsyncpa [#allocation6], 1 }
 0x112   :  { %672 = vsyncpa [#allocation6 + $0x1], 1 }
 0x113   :  { %673 = vsyncpa [#allocation4], 1 }
 0x114   :  { %675 = vsyncpa [#allocation4 + $0x1], 1 }
 0x115   :  { %676 = vsyncpa [#allocation10], 1 }
 0x116   :  { %678 = vsyncpa [#allocation10 + $0x1], 1 }
 0x117   :  { %679 = vsyncpa [#allocation13], 1 }
 0x118   :  { %681 = vsyncpa [#allocation13 + $0x1], 1 }

</bundles_post_ra>
